<compile_context>
chip_gen: v6e
topology: v6e:2x2x1
jax: 0.10.0
libtpu: 0.0.40
codegen_flags: <defaults>
</compile_context>

<pallas_src>
import functools
import math

import jax
import jax.numpy as jnp
from jax.experimental import pallas as pl
from jax.experimental.pallas import tpu as pltpu


# ----------------------------------------------------------------------------
# helpers
# ----------------------------------------------------------------------------

def _pick_tile(n, candidates=(512, 256, 128, 64, 32, 16, 8)):
    """Largest candidate tile that evenly divides n, else the full extent."""
    for c in candidates:
        if c <= n and n % c == 0:
            return c
    return n


def _vmem_cap_bytes():
    try:
        return int(pltpu.get_tpu_info().vmem_capacity_bytes)
    except Exception:
        # Conservative default (v7x has 64 MiB per TensorCore).
        return 64 << 20


def _vmem_limit(est_bytes):
    """Explicit scoped-VMEM budget: 2x the block-plan estimate + 8 MiB headroom,
    floored at 16 MiB and capped below the chip's physical VMEM (v7x-safe)."""
    cap = int(0.85 * _vmem_cap_bytes())
    want = max(2 * int(est_bytes) + (8 << 20), 16 << 20)
    return int(min(want, cap))


# ----------------------------------------------------------------------------
# kernel 1: Q/K/V projections on fat row tiles
# ----------------------------------------------------------------------------

def _qkv_proj_kernel(xq_ref, xk_ref, xv_ref,
                     wq_ref, wk_ref, wv_ref,
                     bq_ref, bk_ref, bv_ref,
                     q_out_ref, k_out_ref, v_out_ref):
    # bf16 (compute dtype) MXU operands, f32 accumulation.
    q = jnp.dot(xq_ref[...], wq_ref[...],
                preferred_element_type=jnp.float32) + bq_ref[...]
    k = jnp.dot(xk_ref[...], wk_ref[...],
                preferred_element_type=jnp.float32) + bk_ref[...]
    v = jnp.dot(xv_ref[...], wv_ref[...],
                preferred_element_type=jnp.float32) + bv_ref[...]
    q_out_ref[...] = q.astype(q_out_ref.dtype)
    k_out_ref[...] = k.astype(k_out_ref.dtype)
    v_out_ref[...] = v.astype(v_out_ref.dtype)


def _qkv_projection(xq, xk, xv, wq, wk, wv, bq, bk, bv, *, out_dtype):
    R, H = xq.shape
    tr = _pick_tile(R)                      # fat row tiles over B*S rows
    grid = (R // tr,)

    row_spec = pl.BlockSpec((tr, H), lambda r: (r, 0))
    full_vmem = pl.BlockSpec(memory_space=pltpu.MemorySpace.VMEM)  # resident, single copy

    est = (3 * H * H * wq.dtype.itemsize            # resident weights
           + 3 * H * bq.dtype.itemsize              # resident biases
           + 2 * 3 * tr * H * xq.dtype.itemsize     # double-buffered input tiles
           + 2 * 3 * tr * H * jnp.dtype(out_dtype).itemsize)

    return pl.pallas_call(
        _qkv_proj_kernel,
        out_shape=tuple(jax.ShapeDtypeStruct((R, H), out_dtype) for _ in range(3)),
        grid_spec=pltpu.PrefetchScalarGridSpec(
            num_scalar_prefetch=0,
            grid=grid,
            in_specs=[row_spec, row_spec, row_spec,
                      full_vmem, full_vmem, full_vmem,
                      full_vmem, full_vmem, full_vmem],
            out_specs=(row_spec, row_spec, row_spec),
        ),
        compiler_params=pltpu.CompilerParams(
            dimension_semantics=("parallel",),
            vmem_limit_bytes=_vmem_limit(est)),
    )(xq, xk, xv, wq, wk, wv, bq, bk, bv)


# ----------------------------------------------------------------------------
# kernel 2: flash attention (online softmax over kv tiles) + fused fc
# ----------------------------------------------------------------------------

def _flash_attn_fc_kernel(q_ref, k_ref, v_ref, wfc_ref, bfc_ref, o_ref,
                          m_scr, l_scr, acc_scr,
                          *, n_heads: int, head_dim: int):
    ki = pl.program_id(2)

    @pl.when(ki == 0)
    def _init():
        m_scr[...] = jnp.full_like(m_scr, -jnp.inf)
        l_scr[...] = jnp.zeros_like(l_scr)
        acc_scr[...] = jnp.zeros_like(acc_scr)

    q = q_ref[0]        # (tq, H) compute dtype; 1/sqrt(head_dim) already folded in
    k = k_ref[0]        # (tk, H)
    v = v_ref[0]        # (tk, H)

    # Static per-head lane slices: no lane-splitting reshape, MXU operands stay
    # lane-dense, and per-head accumulators live in lane slices of one (tq, H)
    # scratch so the final store is lane-dense.
    for h in range(n_heads):
        sl = slice(h * head_dim, (h + 1) * head_dim)
        qh = q[:, sl]
        kh = k[:, sl]
        vh = v[:, sl]

        # scores (tq, tk): contraction over head_dim, rhs transposed on the MXU.
        s = jax.lax.dot_general(qh, kh, (((1,), (1,)), ((), ())),
                                preferred_element_type=jnp.float32)

        m_prev = m_scr[h]                                       # (tq, 1)
        l_prev = l_scr[h]
        m_new = jnp.maximum(m_prev, jnp.max(s, axis=-1, keepdims=True))
        alpha = jnp.exp(m_prev - m_new)                         # EUP
        p = jnp.exp(s - m_new)                                  # EUP

        m_scr[h] = m_new
        l_scr[h] = alpha * l_prev + jnp.sum(p, axis=-1, keepdims=True)
        pv = jnp.dot(p.astype(v.dtype), vh,
                     preferred_element_type=jnp.float32)        # (tq, head_dim)
        acc_scr[:, sl] = alpha * acc_scr[:, sl] + pv

    @pl.when(ki == pl.num_programs(2) - 1)
    def _finalize():
        # Normalize each head in place (EUP reciprocal instead of a VPU divide),
        # then fuse the output projection: out = (acc / l) @ wfc + bfc.
        for h in range(n_heads):
            sl = slice(h * head_dim, (h + 1) * head_dim)
            inv_l = pl.reciprocal(l_scr[h], approx=True)
            acc_scr[:, sl] = acc_scr[:, sl] * inv_l
        x = acc_scr[...].astype(wfc_ref.dtype)                  # (tq, H)
        out = jnp.dot(x, wfc_ref[...],
                      preferred_element_type=jnp.float32) + bfc_ref[...]
        o_ref[0] = out.astype(o_ref.dtype)


def _flash_attention_fc(Q, K, V, wfc, bfc, *, n_heads, head_dim, out_dtype):
    B, S, H = Q.shape
    tq = _pick_tile(S, (256, 128, 64, 32, 16, 8))
    tk = _pick_tile(S, (512, 256, 128, 64, 32, 16, 8))
    grid = (B, S // tq, S // tk)

    q_spec = pl.BlockSpec((1, tq, H), lambda b, qi, ki: (b, qi, 0))
    kv_spec = pl.BlockSpec((1, tk, H), lambda b, qi, ki: (b, ki, 0))
    o_spec = pl.BlockSpec((1, tq, H), lambda b, qi, ki: (b, qi, 0))
    full_vmem = pl.BlockSpec(memory_space=pltpu.MemorySpace.VMEM)  # resident weights

    cd_size = Q.dtype.itemsize
    est = (H * H * wfc.dtype.itemsize + H * bfc.dtype.itemsize      # resident fc weights
           + 2 * (tq * H + 2 * tk * H) * cd_size                    # double-buffered q/k/v tiles
           + 2 * tq * H * jnp.dtype(out_dtype).itemsize             # double-buffered output tile
           + (2 * n_heads * tq * 128 + tq * max(H, 128)) * 4        # padded m/l/acc scratch
           + 4 * tq * tk * 4)                                       # score/prob temporaries

    kernel = functools.partial(_flash_attn_fc_kernel,
                               n_heads=n_heads, head_dim=head_dim)

    return pl.pallas_call(
        kernel,
        out_shape=jax.ShapeDtypeStruct((B, S, H), out_dtype),
        grid_spec=pltpu.PrefetchScalarGridSpec(
            num_scalar_prefetch=0,
            grid=grid,
            in_specs=[q_spec, kv_spec, kv_spec, full_vmem, full_vmem],
            out_specs=o_spec,
            scratch_shapes=[
                pltpu.VMEM((n_heads, tq, 1), jnp.float32),   # running max m
                pltpu.VMEM((n_heads, tq, 1), jnp.float32),   # running sum l
                pltpu.VMEM((tq, H), jnp.float32),            # per-head acc (lane slices)
            ]),
        compiler_params=pltpu.CompilerParams(
            dimension_semantics=("parallel", "parallel", "arbitrary"),
            vmem_limit_bytes=_vmem_limit(est)),
    )(Q, K, V, wfc, bfc)


# ----------------------------------------------------------------------------
# public wrapper
# ----------------------------------------------------------------------------

def self_attention(query, key, value, params, *, n_heads: int,
                   compute_dtype=jnp.bfloat16):
    """query/key/value: (B, S, H). params: dict of weights (H,H) and biases (H,)."""
    B, S, H = query.shape
    assert H % n_heads == 0
    head_dim = H // n_heads
    inv_scale = 1.0 / math.sqrt(head_dim)

    cd = jnp.dtype(compute_dtype)

    # Fold 1/sqrt(head_dim) into the Q projection (weight + bias) so no divide is
    # ever applied to the (tq, tk) score tiles inside the kernel.
    wq = (params["wq"] * inv_scale).astype(cd)
    bq = (params["bq"] * inv_scale).reshape(1, H).astype(cd)
    wk = params["wk"].astype(cd)
    bk = params["bk"].reshape(1, H).astype(cd)
    wv = params["wv"].astype(cd)
    bv = params["bv"].reshape(1, H).astype(cd)
    wfc = params["wfc"].astype(cd)
    bfc = params["bfc"].reshape(1, H).astype(cd)

    # Fold batch into rows so the projection matmuls run on fat row tiles.
    R = B * S
    xq = query.reshape(R, H).astype(cd)
    xk = key.reshape(R, H).astype(cd)
    xv = value.reshape(R, H).astype(cd)

    q_p, k_p, v_p = _qkv_projection(xq, xk, xv, wq, wk, wv, bq, bk, bv,
                                    out_dtype=cd)

    Q = q_p.reshape(B, S, H)
    K = k_p.reshape(B, S, H)
    V = v_p.reshape(B, S, H)

    return _flash_attention_fc(Q, K, V, wfc, bfc,
                               n_heads=n_heads, head_dim=head_dim,
                               out_dtype=query.dtype)


# ----------------------------------------------------------------------------
# pure-JAX reference (mirrors the PyTorch forward: mask=None, eval mode, f32)
# ----------------------------------------------------------------------------

def self_attention_ref(query, key, value, params, *, n_heads: int):
    B, S, H = query.shape
    hd = H // n_heads
    scale = jnp.sqrt(jnp.float32(hd))
    Q = query @ params["wq"] + params["bq"]
    K = key @ params["wk"] + params["bk"]
    V = value @ params["wv"] + params["bv"]
    Q = Q.reshape(B, S, n_heads, hd).transpose(0, 2, 1, 3)
    K = K.reshape(B, S, n_heads, hd).transpose(0, 2, 1, 3)
    V = V.reshape(B, S, n_heads, hd).transpose(0, 2, 1, 3)
    energy = jnp.einsum('bhqd,bhkd->bhqk', Q, K) / scale
    attention = jax.nn.softmax(energy, axis=-1)
    x = jnp.einsum('bhqk,bhkd->bhqd', attention, V)
    x = x.transpose(0, 2, 1, 3).reshape(B, S, H)
    return x @ params["wfc"] + params["bfc"]


if __name__ == "__main__":
    B, S, H, NH = 2, 8, 32, 4

    key0 = jax.random.PRNGKey(0)
    keys = jax.random.split(key0, 12)
    w_init = 1.0 / math.sqrt(H)

    params = {
        "wq":  jax.random.normal(keys[0], (H, H), jnp.float32) * w_init,
        "bq":  jax.random.normal(keys[1], (H,), jnp.float32) * 0.1,
        "wk":  jax.random.normal(keys[2], (H, H), jnp.float32) * w_init,
        "bk":  jax.random.normal(keys[3], (H,), jnp.float32) * 0.1,
        "wv":  jax.random.normal(keys[4], (H, H), jnp.float32) * w_init,
        "bv":  jax.random.normal(keys[5], (H,), jnp.float32) * 0.1,
        "wfc": jax.random.normal(keys[6], (H, H), jnp.float32) * w_init,
        "bfc": jax.random.normal(keys[7], (H,), jnp.float32) * 0.1,
    }

    query = jax.random.normal(keys[8], (B, S, H), jnp.float32)
    key_t = jax.random.normal(keys[9], (B, S, H), jnp.float32)
    value = jax.random.normal(keys[10], (B, S, H), jnp.float32)

    out = self_attention(query, key_t, value, params, n_heads=NH)
    out = jax.block_until_ready(out)

    ref = self_attention_ref(query, key_t, value, params, n_heads=NH)
    assert out.shape == (B, S, H)
    max_err = float(jnp.max(jnp.abs(out.astype(jnp.float32) - ref)))
    # bf16 MXU operands (f32 accumulation) + approx reciprocal -> bf16-level tolerance.
    assert jnp.allclose(out.astype(jnp.float32), ref, atol=7.5e-2, rtol=7.5e-2), (
        f"max abs err {max_err}")

    print("KERNEL_OK")
</pallas_src>

<mosaic_0001>
module attributes {stable_mosaic.version = 11 : i64} {
  func.func @_qkv_proj_kernel(%arg0: i32, %arg1: memref<16x32xbf16, #tpu.memory_space<vmem>>, %arg2: memref<16x32xbf16, #tpu.memory_space<vmem>>, %arg3: memref<16x32xbf16, #tpu.memory_space<vmem>>, %arg4: memref<32x32xbf16, #tpu.memory_space<vmem>>, %arg5: memref<32x32xbf16, #tpu.memory_space<vmem>>, %arg6: memref<32x32xbf16, #tpu.memory_space<vmem>>, %arg7: memref<1x32xbf16, #tpu.memory_space<vmem>>, %arg8: memref<1x32xbf16, #tpu.memory_space<vmem>>, %arg9: memref<1x32xbf16, #tpu.memory_space<vmem>>, %arg10: memref<16x32xbf16, #tpu.memory_space<vmem>>, %arg11: memref<16x32xbf16, #tpu.memory_space<vmem>>, %arg12: memref<16x32xbf16, #tpu.memory_space<vmem>>) attributes {dimension_semantics = [#tpu.dimension_semantics<parallel>], iteration_bounds = array<i64: 1>, scalar_prefetch = 0 : i64, scratch_operands = 0 : i64, tpu.core_type = #tpu.core_type<tc>, window_params = [{transform_indices = @transform_0, window_bounds = array<i64: 16, 32>}, {transform_indices = @transform_1, window_bounds = array<i64: 16, 32>}, {transform_indices = @transform_2, window_bounds = array<i64: 16, 32>}, {pipeline_mode = #tpu.pipeline_mode<synchronous>, transform_indices = @transform_3, window_bounds = array<i64: 32, 32>}, {pipeline_mode = #tpu.pipeline_mode<synchronous>, transform_indices = @transform_4, window_bounds = array<i64: 32, 32>}, {pipeline_mode = #tpu.pipeline_mode<synchronous>, transform_indices = @transform_5, window_bounds = array<i64: 32, 32>}, {pipeline_mode = #tpu.pipeline_mode<synchronous>, transform_indices = @transform_6, window_bounds = array<i64: 1, 32>}, {pipeline_mode = #tpu.pipeline_mode<synchronous>, transform_indices = @transform_7, window_bounds = array<i64: 1, 32>}, {pipeline_mode = #tpu.pipeline_mode<synchronous>, transform_indices = @transform_8, window_bounds = array<i64: 1, 32>}, {transform_indices = @transform_9, window_bounds = array<i64: 16, 32>}, {transform_indices = @transform_10, window_bounds = array<i64: 16, 32>}, {transform_indices = @transform_11, window_bounds = array<i64: 16, 32>}]} {
    %c0 = arith.constant 0 : index
    %c0_0 = arith.constant 0 : index
    %0 = vector.load %arg1[%c0, %c0_0] : memref<16x32xbf16, #tpu.memory_space<vmem>>, vector<16x32xbf16>
    %c0_1 = arith.constant 0 : index
    %c0_2 = arith.constant 0 : index
    %1 = vector.load %arg4[%c0_1, %c0_2] : memref<32x32xbf16, #tpu.memory_space<vmem>>, vector<32x32xbf16>
    %cst = arith.constant dense<0.000000e+00> : vector<16x32xf32>
    %2 = tpu.matmul %0, %1, %cst {dimension_numbers = #tpu.dot_dimension_numbers<[1], [0], [0], [1], [0, 0, 1, 1], [], []>} : vector<16x32xbf16>, vector<32x32xbf16>, vector<16x32xf32> -> vector<16x32xf32>
    %c0_3 = arith.constant 0 : index
    %c0_4 = arith.constant 0 : index
    %3 = vector.load %arg7[%c0_3, %c0_4] : memref<1x32xbf16, #tpu.memory_space<vmem>>, vector<1x32xbf16>
    %4 = arith.extf %3 : vector<1x32xbf16> to vector<1x32xf32>
    %5 = vector.broadcast %4 : vector<1x32xf32> to vector<16x32xf32>
    %6 = arith.addf %2, %5 : vector<16x32xf32>
    %c0_5 = arith.constant 0 : index
    %c0_6 = arith.constant 0 : index
    %7 = vector.load %arg2[%c0_5, %c0_6] : memref<16x32xbf16, #tpu.memory_space<vmem>>, vector<16x32xbf16>
    %c0_7 = arith.constant 0 : index
    %c0_8 = arith.constant 0 : index
    %8 = vector.load %arg5[%c0_7, %c0_8] : memref<32x32xbf16, #tpu.memory_space<vmem>>, vector<32x32xbf16>
    %cst_9 = arith.constant dense<0.000000e+00> : vector<16x32xf32>
    %9 = tpu.matmul %7, %8, %cst_9 {dimension_numbers = #tpu.dot_dimension_numbers<[1], [0], [0], [1], [0, 0, 1, 1], [], []>} : vector<16x32xbf16>, vector<32x32xbf16>, vector<16x32xf32> -> vector<16x32xf32>
    %c0_10 = arith.constant 0 : index
    %c0_11 = arith.constant 0 : index
    %10 = vector.load %arg8[%c0_10, %c0_11] : memref<1x32xbf16, #tpu.memory_space<vmem>>, vector<1x32xbf16>
    %11 = arith.extf %10 : vector<1x32xbf16> to vector<1x32xf32>
    %12 = vector.broadcast %11 : vector<1x32xf32> to vector<16x32xf32>
    %13 = arith.addf %9, %12 : vector<16x32xf32>
    %c0_12 = arith.constant 0 : index
    %c0_13 = arith.constant 0 : index
    %14 = vector.load %arg3[%c0_12, %c0_13] : memref<16x32xbf16, #tpu.memory_space<vmem>>, vector<16x32xbf16>
    %c0_14 = arith.constant 0 : index
    %c0_15 = arith.constant 0 : index
    %15 = vector.load %arg6[%c0_14, %c0_15] : memref<32x32xbf16, #tpu.memory_space<vmem>>, vector<32x32xbf16>
    %cst_16 = arith.constant dense<0.000000e+00> : vector<16x32xf32>
    %16 = tpu.matmul %14, %15, %cst_16 {dimension_numbers = #tpu.dot_dimension_numbers<[1], [0], [0], [1], [0, 0, 1, 1], [], []>} : vector<16x32xbf16>, vector<32x32xbf16>, vector<16x32xf32> -> vector<16x32xf32>
    %c0_17 = arith.constant 0 : index
    %c0_18 = arith.constant 0 : index
    %17 = vector.load %arg9[%c0_17, %c0_18] : memref<1x32xbf16, #tpu.memory_space<vmem>>, vector<1x32xbf16>
    %18 = arith.extf %17 : vector<1x32xbf16> to vector<1x32xf32>
    %19 = vector.broadcast %18 : vector<1x32xf32> to vector<16x32xf32>
    %20 = arith.addf %16, %19 : vector<16x32xf32>
    %21 = arith.truncf %6 : vector<16x32xf32> to vector<16x32xbf16>
    %c0_19 = arith.constant 0 : index
    %c0_20 = arith.constant 0 : index
    %22 = vector.load %arg10[%c0_19, %c0_20] : memref<16x32xbf16, #tpu.memory_space<vmem>>, vector<16x32xbf16>
    tpu.vector_store %arg10[%c0_19, %c0_20], %21 {strides = array<i32>} : memref<16x32xbf16, #tpu.memory_space<vmem>>, vector<16x32xbf16>,
    %23 = arith.truncf %13 : vector<16x32xf32> to vector<16x32xbf16>
    %c0_21 = arith.constant 0 : index
    %c0_22 = arith.constant 0 : index
    %24 = vector.load %arg11[%c0_21, %c0_22] : memref<16x32xbf16, #tpu.memory_space<vmem>>, vector<16x32xbf16>
    tpu.vector_store %arg11[%c0_21, %c0_22], %23 {strides = array<i32>} : memref<16x32xbf16, #tpu.memory_space<vmem>>, vector<16x32xbf16>,
    %25 = arith.truncf %20 : vector<16x32xf32> to vector<16x32xbf16>
    %c0_23 = arith.constant 0 : index
    %c0_24 = arith.constant 0 : index
    %26 = vector.load %arg12[%c0_23, %c0_24] : memref<16x32xbf16, #tpu.memory_space<vmem>>, vector<16x32xbf16>
    tpu.vector_store %arg12[%c0_23, %c0_24], %25 {strides = array<i32>} : memref<16x32xbf16, #tpu.memory_space<vmem>>, vector<16x32xbf16>,
    return
  }
  func.func @transform_0(%arg0: i32) -> (i32, i32) {
    %c0_i32 = arith.constant 0 : i32
    %c0_i32_0 = arith.constant 0 : i32
    return %arg0, %c0_i32 : i32, i32
  }
  func.func @transform_1(%arg0: i32) -> (i32, i32) {
    %c0_i32 = arith.constant 0 : i32
    %c0_i32_0 = arith.constant 0 : i32
    return %arg0, %c0_i32 : i32, i32
  }
  func.func @transform_2(%arg0: i32) -> (i32, i32) {
    %c0_i32 = arith.constant 0 : i32
    %c0_i32_0 = arith.constant 0 : i32
    return %arg0, %c0_i32 : i32, i32
  }
  func.func @transform_3(%arg0: i32) -> (i32, i32) {
    %c0_i32 = arith.constant 0 : i32
    %c0_i32_0 = arith.constant 0 : i32
    %c0_i32_1 = arith.constant 0 : i32
    return %c0_i32, %c0_i32_0 : i32, i32
  }
  func.func @transform_4(%arg0: i32) -> (i32, i32) {
    %c0_i32 = arith.constant 0 : i32
    %c0_i32_0 = arith.constant 0 : i32
    %c0_i32_1 = arith.constant 0 : i32
    return %c0_i32, %c0_i32_0 : i32, i32
  }
  func.func @transform_5(%arg0: i32) -> (i32, i32) {
    %c0_i32 = arith.constant 0 : i32
    %c0_i32_0 = arith.constant 0 : i32
    %c0_i32_1 = arith.constant 0 : i32
    return %c0_i32, %c0_i32_0 : i32, i32
  }
  func.func @transform_6(%arg0: i32) -> (i32, i32) {
    %c0_i32 = arith.constant 0 : i32
    %c0_i32_0 = arith.constant 0 : i32
    %c0_i32_1 = arith.constant 0 : i32
    return %c0_i32, %c0_i32_0 : i32, i32
  }
  func.func @transform_7(%arg0: i32) -> (i32, i32) {
    %c0_i32 = arith.constant 0 : i32
    %c0_i32_0 = arith.constant 0 : i32
    %c0_i32_1 = arith.constant 0 : i32
    return %c0_i32, %c0_i32_0 : i32, i32
  }
  func.func @transform_8(%arg0: i32) -> (i32, i32) {
    %c0_i32 = arith.constant 0 : i32
    %c0_i32_0 = arith.constant 0 : i32
    %c0_i32_1 = arith.constant 0 : i32
    return %c0_i32, %c0_i32_0 : i32, i32
  }
  func.func @transform_9(%arg0: i32) -> (i32, i32) {
    %c0_i32 = arith.constant 0 : i32
    %c0_i32_0 = arith.constant 0 : i32
    return %arg0, %c0_i32 : i32, i32
  }
  func.func @transform_10(%arg0: i32) -> (i32, i32) {
    %c0_i32 = arith.constant 0 : i32
    %c0_i32_0 = arith.constant 0 : i32
    return %arg0, %c0_i32 : i32, i32
  }
  func.func @transform_11(%arg0: i32) -> (i32, i32) {
    %c0_i32 = arith.constant 0 : i32
    %c0_i32_0 = arith.constant 0 : i32
    return %arg0, %c0_i32 : i32, i32
  }
}

</mosaic_0001>

<bundles_post_ra>
// kernel: tpu_custom_call.1
= control target key start
LH: loop header
LB: loop body
LE: loop exit
PB: predicated region body
PF: predicated region fallthrough
CT: control target
= control target key end

     0   :  { %17 = vsyncpa [#allocation3], 0  ;;  %s838_s0 = inlined_call_operand.hbm [shape: bf16[16,32], index: 0, kind: input, shape index: {}]   ;;  %s839_s1 = inlined_call_operand.hbm [shape: bf16[16,32], index: 1, kind: input, shape index: {}]   ;;  %s840_s2 = inlined_call_operand.hbm [shape: bf16[16,32], index: 2, kind: input, shape index: {}]   ;;  %s841_s3 = inlined_call_operand.hbm [shape: bf16[32,32], index: 3, kind: input, shape index: {}]   ;;  %s842_s4 = inlined_call_operand.hbm [shape: bf16[32,32], index: 4, kind: input, shape index: {}]   ;;  %s843_s5 = inlined_call_operand.hbm [shape: bf16[32,32], index: 5, kind: input, shape index: {}]   ;;  %s844_s6 = inlined_call_operand.vmem [shape: bf16[1,32], index: 6, kind: input, shape index: {}]   ;;  %s845_s7 = inlined_call_operand.vmem [shape: bf16[1,32], index: 7, kind: input, shape index: {}]   ;;  %s846_s8 = inlined_call_operand.vmem [shape: bf16[1,32], index: 8, kind: input, shape index: {}]   ;;  %s847_s9 = inlined_call_operand.hbm [shape: bf16[16,32], index: 9, kind: output, shape index: {0}]   ;;  %s848_s10 = inlined_call_operand.hbm [shape: bf16[16,32], index: 10, kind: output, shape index: {1}]   ;;  %s849_s11 = inlined_call_operand.hbm [shape: bf16[16,32], index: 11, kind: output, shape index: {2}]  }
   0x1   :  { %18 = vsyncpa [#allocation6], 0 }
   0x2   :  { %19 = vsyncpa [#allocation9], 0 }
   0x3   :  { %20 = vsyncpa [#allocation12], 0 }
   0x4   :  { %21 = vsyncpa [#allocation4], 0 }
   0x5   :  { %22 = vsyncpa [#allocation15], 0  ;;  %s693_s17 = smov [#allocation5]   ;;  %s694_s19 = smov [#allocation8]  }
   0x6   :  { %s40_s18 = sshll.u32 %s693_s17, 4  ;;  %s64_s20 = sshll.u32 %s694_s19, 4  ;;  %s41_s18 = int_to_ptr.vmem [resolvable:$true] %s40_s18  ;;  %s65_s20 = int_to_ptr.vmem [resolvable:$true] %s64_s20 }
   0x7   :  { %s509_s21 = scalar_lea.vmem %s41_s18, 128  ;;  %p514_p1 = scmp.lt.s32.totalorder %s41_s18, %s41_s18 }
   0x8   :  { %p510_p0 = scmp.ne.s32.totalorder %s41_s18, %s509_s21  ;;  %p515_p2 = scmp.lt.s32.totalorder %s509_s21, %s509_s21 }
   0xa   :  { %p516_p3 = por %p515_p2, %p514_p1 }
   0xc   :  { %p517_p4 = pnand %p516_p3, %p510_p0 }
   0xe   :  { %520 = shalt.err (!%p517_p4)
}
   0xf   :  { %s695_s22 = smov 64   ;;  %s696_s23 = smov 4  }
  0x10   :  { %46 = dma.hbm_to_vmem [thread:$0]  %s839_s1, 128, %s41_s18, [#allocation6], %s695_s22, %s695_s22, %s696_s23  }
  0x11   :  { %s529_s26 = scalar_lea.vmem %s65_s20, 256  ;;  %p534_p6 = scmp.lt.s32.totalorder %s65_s20, %s65_s20 }
  0x12   :  { %p530_p5 = scmp.ne.s32.totalorder %s65_s20, %s529_s26  ;;  %p535_p7 = scmp.lt.s32.totalorder %s529_s26, %s529_s26 }
  0x14   :  { %p536_p8 = por %p535_p7, %p534_p6 }
  0x16   :  { %p537_p9 = pnand %p536_p8, %p530_p5 }
  0x18   :  { %540 = shalt.err (!%p537_p9)
}
  0x19   :  { %70 = dma.hbm_to_vmem [thread:$0]  %s841_s3, 256, %s65_s20, [#allocation9], %s695_s22, %s695_s22, %s696_s23  }
  0x1a   :  { %s697_s29 = smov [#allocation2]   ;;  %s698_s12 = smov [#allocation7]  }
  0x1b   :  { %s28_s30 = sshll.u32 %s697_s29, 4  ;;  %s52_s13 = sshll.u32 %s698_s12, 4  ;;  %s29_s30 = int_to_ptr.vmem [resolvable:$true] %s28_s30  ;;  %s53_s13 = int_to_ptr.vmem [resolvable:$true] %s52_s13 }
  0x1c   :  { %s549_s1 = scalar_lea.vmem %s29_s30, 128  ;;  %p554_p11 = scmp.lt.s32.totalorder %s29_s30, %s29_s30 }
  0x1d   :  { %p550_p10 = scmp.ne.s32.totalorder %s29_s30, %s549_s1  ;;  %p555_p12 = scmp.lt.s32.totalorder %s549_s1, %s549_s1 }
  0x1f   :  { %p556_p13 = por %p555_p12, %p554_p11 }
  0x21   :  { %p557_p0 = pnand %p556_p13, %p550_p10 }
  0x23   :  { %560 = shalt.err (!%p557_p0)
}
  0x24   :  { %34 = dma.hbm_to_vmem [thread:$0]  %s838_s0, 128, %s29_s30, [#allocation3], %s695_s22, %s695_s22, %s696_s23  }
  0x25   :  { %s569_s3 = scalar_lea.vmem %s53_s13, 128  ;;  %p574_p2 = scmp.lt.s32.totalorder %s53_s13, %s53_s13 }
  0x26   :  { %p570_p1 = scmp.ne.s32.totalorder %s53_s13, %s569_s3  ;;  %p575_p3 = scmp.lt.s32.totalorder %s569_s3, %s569_s3 }
  0x28   :  { %p576_p4 = por %p575_p3, %p574_p2 }
  0x2a   :  { %p577_p5 = pnand %p576_p4, %p570_p1 }
  0x2c   :  { %580 = shalt.err (!%p577_p5)
}
  0x2d   :  { %58 = dma.hbm_to_vmem [thread:$0]  %s840_s2, 128, %s53_s13, [#allocation6], %s695_s22, %s695_s22, %s696_s23  }
  0x2e   :  { %s699_s18 = smov [#allocation10]   ;;  %s700_s20 = smov [#allocation11]  }
  0x2f   :  { %s76_s19 = sshll.u32 %s699_s18, 4  ;;  %s88_s21 = sshll.u32 %s700_s20, 4  ;;  %s77_s19 = int_to_ptr.vmem [resolvable:$true] %s76_s19  ;;  %s89_s21 = int_to_ptr.vmem [resolvable:$true] %s88_s21 }
  0x30   :  { %s589_s0 = scalar_lea.vmem %s77_s19, 256  ;;  %p594_p7 = scmp.lt.s32.totalorder %s77_s19, %s77_s19 }
  0x31   :  { %p590_p6 = scmp.ne.s32.totalorder %s77_s19, %s589_s0  ;;  %p595_p8 = scmp.lt.s32.totalorder %s589_s0, %s589_s0 }
  0x33   :  { %p596_p9 = por %p595_p8, %p594_p7 }
  0x35   :  { %p597_p10 = pnand %p596_p9, %p590_p6 }
  0x37   :  { %600 = shalt.err (!%p597_p10)
}
  0x38   :  { %82 = dma.hbm_to_vmem [thread:$0]  %s842_s4, 256, %s77_s19, [#allocation9], %s695_s22, %s695_s22, %s696_s23  }
  0x39   :  { %s609_s2 = scalar_lea.vmem %s89_s21, 256  ;;  %p614_p12 = scmp.lt.s32.totalorder %s89_s21, %s89_s21 }
  0x3a   :  { %p610_p11 = scmp.ne.s32.totalorder %s89_s21, %s609_s2  ;;  %p615_p13 = scmp.lt.s32.totalorder %s609_s2, %s609_s2 }
  0x3c   :  { %p616_p0 = por %p615_p13, %p614_p12 }
  0x3e   :  { %p617_p1 = pnand %p616_p0, %p610_p11 }
  0x40   :  { %620 = shalt.err (!%p617_p1)
}
  0x41   :  { %94 = dma.hbm_to_vmem [thread:$0]  %s843_s5, 256, %s89_s21, [#allocation12], %s695_s22, %s695_s22, %s696_s23  }
  0x42   :  { %681 = dma.done.wait [#allocation3], 128  }
  0x43   :  { %682 = vsyncadd [#allocation3], 4294967168 }
  0x44   :  { %683 = dma.done.wait [#allocation6], 256  }
  0x45   :  { %684 = vsyncadd [#allocation6], 4294967040 }
  0x46   :  { %685 = dma.done.wait [#allocation9], 512  }
  0x47   :  { %686 = vsyncadd [#allocation9], 4294966784 }
  0x48   :  { %687 = dma.done.wait [#allocation12], 256  }
  0x49   :  { %688 = vsyncadd [#allocation12], 4294967040  ;;  %v701_v0 = vmov 0.0   ;;  %vm702_vm0 = vmmov 0   ;;  %v492_v1 = vld [vmem:[#allocation8 + $0x8] sm:$0xff]   ;;  %v493_v2 = vld [vmem:[#allocation10 + $0x8] sm:$0xff]   ;;  %v128_v10 = vlaneseq }
  0x4a   :  { %455 = vmatprep.subr.bf16.mxu0 %v701_v0  ;;  %463 = vmatprep.subr.bf16.mxu1 %v701_v0  ;;  %v494_v3 = vld [vmem:[#allocation8] sm:$0xff]   ;;  %v495_v4 = vld [vmem:[#allocation10] sm:$0xff]   ;;  %v496_v5 = vld [vmem:[#allocation2] sm:$0xff]   ;;  %vm149_vm1 = vcmask 261120   ;;  %vm348_vm2 = vcmask 257024   ;;  %s704_s13 = smov [#allocation14]  }
  0x4b   :  { %459 = vmatprep.mubr.msk.bf16.mxu0 %vm702_vm0, %v701_v0  ;;  %467 = vmatprep.mubr.msk.bf16.mxu1 %vm702_vm0, %v701_v0  ;;  %v497_v6 = vld [vmem:[#allocation11 + $0x8] sm:$0xff]   ;;  %v498_v7 = vld [vmem:[#allocation5] sm:$0xff]   ;;  %v499_v8 = vld [vmem:[#allocation11] sm:$0xff]   ;;  %v129_v11 = vshrl.u32 %v128_v10, 7 }
  0x4c   :  { %456 = vmatpush3.bf16.msra.mxu0 %v492_v1  ;;  %464 = vmatpush3.bf16.msra.mxu1 %v493_v2  ;;  %v500_v9 = vld [vmem:[#allocation7] sm:$0xff]   ;;  %v126_v12 = vld [vmem:[%s844_s6] sm:$0x1]  ;;  %s703_s6 = smov [#allocation13]  }
  0x4d   :  { %457 = vmatprep.subr.bf16.mxu0 %v701_v0  ;;  %465 = vmatprep.subr.bf16.mxu1 %v701_v0  ;;  %v200_v13 = vld [vmem:[%s845_s7] sm:$0x1]  ;;  %v127_v14 = vunpack.c.l.bf16 %v126_v12  ;;  %v130_v15 = vsub.s32 0, %v129_v11  ;;  %s376_s7 = sshll.u32 %s703_s6, 4  ;;  %s377_s7 = int_to_ptr.vmem [resolvable:$true] %s376_s7 }
  0x4e   :  { %v201_v16 = vunpack.c.l.bf16 %v200_v13  ;;  %v273_v19 = vld [vmem:[%s846_s8] sm:$0x1]  ;;  %s388_s8 = sshll.u32 %s704_s13, 4  ;;  %s621_s1 = scalar_lea.vmem %s377_s7, 128  ;;  %s389_s8 = int_to_ptr.vmem [resolvable:$true] %s388_s8 }
  0x4f   :  { %v131_v17 = vrot.slane %v127_v14, %v130_v15  ;;  %v274_v23 = vunpack.c.l.bf16 %v273_v19  ;;  %p622_p2 = scmp.ne.s32.totalorder %s377_s7, %s621_s1  ;;  %p626_p3 = scmp.lt.s32.totalorder %s377_s7, %s377_s7 }
  0x50   :  { %458 = vmatpush3.bf16.msra.mxu0 %v494_v3  ;;  %466 = vmatpush3.bf16.msra.mxu1 %v495_v4  ;;  %v205_v18 = vrot.slane %v201_v16, %v130_v15  ;;  %p627_p4 = scmp.lt.s32.totalorder %s621_s1, %s621_s1 }
  0x51   :  { %471 = vmatprep.subr.bf16.mxu0 %v701_v0  ;;  %v278_v32 = vrot.slane %v274_v23, %v130_v15 }
  0x52   :  { %p628_p5 = por %p627_p4, %p626_p3 }
  0x53   :  { %460 = vmatmul.mubr.msk.bf16.vlgmr.msra.gmra.mxu0 %vm149_vm1, %v496_v5  ;;  %468 = vmatmul.mubr.msk.bf16.vlgmr.msra.gmra.mxu1 %vm149_vm1, %v498_v7 }
  0x54   :  { %472 = vmatpush3.bf16.msra.mxu0 %v497_v6  ;;  %475 = vmatprep.mubr.msk.bf16.mxu0 %vm702_vm0, %v701_v0  ;;  %p629_p6 = pnand %p628_p5, %p622_p2 }
  0x55   :  { %473 = vmatprep.subr.bf16.mxu0 %v701_v0 }
  0x58   :  { %474 = vmatpush3.bf16.msra.mxu0 %v499_v8 }
  0x5b   :  { %476 = vmatmul.mubr.msk.bf16.vlgmr.msra.gmra.mxu0 %vm149_vm1, %v500_v9 }
 0x113   :  { %v187_v20 = vpop.f32.mrf.mxu0  ;;  %v260_v22 = vpop.f32.mrf.mxu1 }
 0x114   :  { %v188_v21 = vadd.f32 %v187_v20, %v131_v17  ;;  %v261_v25 = vadd.f32 %v260_v22, %v205_v18 }
 0x115   :  { %v461_v24 = vpop.f32.mrf.mxu0  ;;  %v469_v27 = vpop.f32.mrf.mxu1 }
 0x116   :  { %v440_v26 = vpack.c.bf16 %v188_v21, %v188_v21  ;;  %v442_v28 = vpack.c.bf16 %v261_v25, %v261_v25 }
 0x117   :  { %v190_v29 = vpop.f32.mrf.mxu0  ;;  %v263_v31 = vpop.f32.mrf.mxu1 }
 0x118   :  { %v191_v30 = vadd.f32 %v190_v29, %v131_v17  ;;  %349 = vst.msk [vmem:[#allocation13] sm:$0xf] %vm348_vm2, %v440_v26  ;;  %v264_v34 = vadd.f32 %v263_v31, %v205_v18  ;;  %359 = vst.msk [vmem:[#allocation14] sm:$0xf] %vm348_vm2, %v442_v28 }
 0x119   :  { %v462_v33 = vpop.f32.mrf.mxu0  ;;  %v470_v36 = vpop.f32.mrf.mxu1 }
 0x11a   :  { %v441_v35 = vpack.c.bf16 %v191_v30, %v191_v30  ;;  %v443_v37 = vpack.c.bf16 %v264_v34, %v264_v34 }
 0x11b   :  { %v333_v38 = vpop.f32.mrf.mxu0 }
 0x11c   :  { %v334_v39 = vadd.f32 %v333_v38, %v278_v32  ;;  %350 = vst.msk [vmem:[#allocation13 + $0x4] sm:$0xf] %vm348_vm2, %v441_v35  ;;  %360 = vst.msk [vmem:[#allocation14 + $0x4] sm:$0xf] %vm348_vm2, %v443_v37 }
 0x11d   :  { %v477_v40 = vpop.f32.mrf.mxu0 }
 0x11e   :  { %632 = shalt.err (!%p629_p6)
}
 0x11f   :  { %382 = dma.vmem_to_hbm [thread:$0]  %s377_s7, 128, %s847_s9, [#allocation4], %s695_s22, %s695_s22, %s696_s23   ;;  %v444_v41 = vpack.c.bf16 %v334_v39, %v334_v39 }
 0x120   :  { %s641_s3 = scalar_lea.vmem %s389_s8, 128  ;;  %p646_p8 = scmp.lt.s32.totalorder %s389_s8, %s389_s8 }
 0x121   :  { %p642_p7 = scmp.ne.s32.totalorder %s389_s8, %s641_s3  ;;  %p647_p9 = scmp.lt.s32.totalorder %s641_s3, %s641_s3 }
 0x123   :  { %p648_p10 = por %p647_p9, %p646_p8 }
 0x125   :  { %p649_p11 = pnand %p648_p10, %p642_p7 }
 0x127   :  { %652 = shalt.err (!%p649_p11)
}
 0x128   :  { %394 = dma.vmem_to_hbm [thread:$0]  %s389_s8, 128, %s848_s10, [#allocation15], %s695_s22, %s695_s22, %s696_s23   ;;  %v336_v42 = vpop.f32.mrf.mxu0  ;;  %369 = vst.msk [vmem:[#allocation16] sm:$0xf] %vm348_vm2, %v444_v41 }
 0x129   :  { %s705_s18 = smov [#allocation16]   ;;  %v337_v43 = vadd.f32 %v336_v42, %v278_v32 }
 0x12a   :  { %s400_s19 = sshll.u32 %s705_s18, 4  ;;  %v478_v44 = vpop.f32.mrf.mxu0  ;;  %s401_s19 = int_to_ptr.vmem [resolvable:$true] %s400_s19 }
 0x12b   :  { %v445_v45 = vpack.c.bf16 %v337_v43, %v337_v43  ;;  %s661_s9 = scalar_lea.vmem %s401_s19, 128  ;;  %p666_p13 = scmp.lt.s32.totalorder %s401_s19, %s401_s19 }
 0x12c   :  { %p662_p12 = scmp.ne.s32.totalorder %s401_s19, %s661_s9  ;;  %p667_p0 = scmp.lt.s32.totalorder %s661_s9, %s661_s9 }
 0x12d   :  { %370 = vst.msk [vmem:[#allocation16 + $0x4] sm:$0xf] %vm348_vm2, %v445_v45 }
 0x12e   :  { %p668_p1 = por %p667_p0, %p666_p13 }
 0x130   :  { %p669_p2 = pnand %p668_p1, %p662_p12 }
 0x132   :  { %672 = shalt.err (!%p669_p2)
}
 0x133   :  { %406 = dma.vmem_to_hbm [thread:$0]  %s401_s19, 128, %s849_s11, [#allocation15], %s695_s22, %s695_s22, %s696_s23  }
 0x134   :  { %689 = dma.done.wait [#allocation4], 128  }
 0x135   :  { %690 = vsyncadd [#allocation4], 4294967168 }
 0x136   :  { %691 = dma.done.wait [#allocation15], 256  }
 0x137   :  { %692 = vsyncadd [#allocation15], 4294967040 }
 0x138   :  { %416 = vsyncpa [#allocation3], 1 }
 0x139   :  { %417 = vsyncpa [#allocation6], 1 }
 0x13a   :  { %418 = vsyncpa [#allocation9], 1 }
 0x13b   :  { %419 = vsyncpa [#allocation12], 1 }
 0x13c   :  { %420 = vsyncpa [#allocation4], 1 }
 0x13d   :  { %421 = vsyncpa [#allocation15], 1 }

</bundles_post_ra>
